<compile_context>
chip_gen: v7x
topology: tpu7x:2x2x1
jax: 0.10.0
libtpu: 0.0.40
codegen_flags: <defaults>
</compile_context>

<pallas_src>
import functools

import jax
import jax.numpy as jnp
from jax.experimental import pallas as pl
from jax.experimental.pallas import tpu as pltpu


# ----------------------------------------------------------------------------
# helpers
# ----------------------------------------------------------------------------
def _round_up(x, m):
    return ((x + m - 1) // m) * m


def _vmem_capacity_bytes():
    """Per-TensorCore VMEM capacity with a per-generation fallback table."""
    try:
        cap = getattr(pltpu.get_tpu_info(), "vmem_capacity_bytes", None)
        if cap:
            return int(cap)
    except Exception:
        pass
    try:
        kind = jax.devices()[0].device_kind.lower()
        if ("v5" in kind) or ("v6" in kind) or ("v4" in kind):
            return 128 * 1024 * 1024
    except Exception:
        pass
    return 64 * 1024 * 1024  # v7x-style per-core VMEM


def _vmem_limit_bytes():
    # Comfortably above the ~cap//3 working-set budget used by _tile_plan.
    cap = _vmem_capacity_bytes()
    return int(min(cap * 3 // 4, 112 * 1024 * 1024))


def _sublane_multiple(itemsize):
    # dtype-native sublane packing: f32 -> 8, bf16 -> 16, int8/fp8 -> 32
    return max(8, 32 // max(int(itemsize), 1))


def _tile_plan(n, per_row_bytes, sub, block_rows):
    """Pick (tile_n, nsplit, tiles_per_split, padded_n).

    tile_n: largest sublane-multiple row tile whose working set fits ~VMEM/3
    (double-buffered inputs + f32 temps), so each grid step is multi-MB and
    the 0.35us/step pipeline overhead is amortized.  nsplit=2 shards the row
    tiles across both TensorCores on megacore parts (v7x)."""
    if block_rows is not None:
        tile_n = max(sub, (int(block_rows) // sub) * sub)
    else:
        budget = _vmem_capacity_bytes() // 3
        tile_n = budget // max(int(per_row_bytes), 1)
        tile_n = max(sub, (tile_n // sub) * sub)
        tile_n = min(tile_n, 32768)
    tile_n = min(tile_n, _round_up(max(n, 1), sub))

    tiles_total = -(-n // tile_n)
    if tiles_total >= 2:
        nsplit = 2
        tiles_per = -(-tiles_total // 2)
    else:
        nsplit, tiles_per = 1, 1
    n_pad = nsplit * tiles_per * tile_n
    return tile_n, nsplit, tiles_per, n_pad


def _pack_lanes(vals, shape):
    """Place scalar partials into lanes 0..k-1 (sublane 0) of a zero vreg-slab."""
    lane = jax.lax.broadcasted_iota(jnp.int32, shape, len(shape) - 1)
    sub = jax.lax.broadcasted_iota(jnp.int32, shape, len(shape) - 2)
    out = jnp.zeros(shape, jnp.float32)
    for k, v in enumerate(vals):
        out = out + jnp.where((sub == 0) & (lane == k),
                              v.astype(jnp.float32), jnp.float32(0.0))
    return out


# ----------------------------------------------------------------------------
# per-tile cross-entropy partial sums (shared by both kernels)
# ----------------------------------------------------------------------------
def _ce_tile(logits, tgt, ignore_index):
    """logits: [T, C] f32, tgt: [T, 1] i32 -> (sum of -log p(target) over valid
    rows, count of valid rows).  Rows with target == ignore_index contribute
    nothing.  Reuses the shifted slab for the target gather (no max add-back)."""
    tn, c = logits.shape
    m = jnp.max(logits, axis=-1, keepdims=True)                                   # [T,1]
    shifted = logits - m                                                           # [T,C]
    lse_s = jnp.log(jnp.sum(jnp.exp(shifted), axis=-1, keepdims=True))            # [T,1]
    col = jax.lax.broadcasted_iota(jnp.int32, (tn, c), 1)
    # fused compare+select gather of the target's shifted logit (no dynamic gather)
    tgt_s = jnp.sum(jnp.where(col == tgt, shifted, 0.0), axis=-1, keepdims=True)  # [T,1]
    valid = (tgt != ignore_index).astype(jnp.float32)                             # [T,1]
    per_row = (lse_s - tgt_s) * valid                                             # == (lse - tgt_logit) * valid
    return jnp.sum(per_row), jnp.sum(valid)


# ----------------------------------------------------------------------------
# Kernel 1: tiled cross-entropy (per-core resident VMEM partials)
# ----------------------------------------------------------------------------
def _ce_loss_kernel(preds_ref, tgt_ref, out_ref, *, ignore_index):
    @pl.when(pl.program_id(1) == 0)
    def _():
        out_ref[...] = jnp.zeros_like(out_ref)

    ce_sum, valid = _ce_tile(preds_ref[...].astype(jnp.float32), tgt_ref[...],
                             ignore_index)
    out_ref[...] += _pack_lanes((ce_sum, valid), out_ref.shape)


def _ce_partial_sums(preds, targets, ignore_index, block_rows=None):
    n, c = preds.shape
    c_pad = _round_up(c, 128)
    itemsize = jnp.dtype(preds.dtype).itemsize
    sub = _sublane_multiple(itemsize)
    # per-row VMEM: 2x double-buffered logits block (real itemsize), 2x lane-padded
    # (tile_n,1) i32 targets block, ~3 f32 [*, C] temps (cast/shifted/exp-select).
    per_row = 2 * c_pad * itemsize + 2 * 128 * 4 + 3 * c_pad * 4
    tile_n, nsplit, tiles_per, n_pad = _tile_plan(n, per_row, sub, block_rows)

    preds_p = jnp.pad(preds, ((0, n_pad - n), (0, 0)))
    # pad with ignore_index so padded rows drop out of both the sum and the divisor
    tgt_p = jnp.pad(targets.astype(jnp.int32).reshape(n, 1),
                    ((0, n_pad - n), (0, 0)), constant_values=ignore_index)

    cost = pl.CostEstimate(
        flops=6 * n_pad * c,
        transcendentals=n_pad * (c + 1),
        bytes_accessed=n_pad * c * itemsize + n_pad * 4 + nsplit * 8 * 128 * 4)

    out = pl.pallas_call(
        functools.partial(_ce_loss_kernel, ignore_index=ignore_index),
        out_shape=jax.ShapeDtypeStruct((nsplit, 8, 128), jnp.float32),
        grid=(nsplit, tiles_per),
        in_specs=[
            pl.BlockSpec((tile_n, c), lambda g, i: (g * tiles_per + i, 0)),
            pl.BlockSpec((tile_n, 1), lambda g, i: (g * tiles_per + i, 0)),
        ],
        out_specs=pl.BlockSpec((1, 8, 128), lambda g, i: (g, 0, 0)),
        compiler_params=pltpu.CompilerParams(
            dimension_semantics=("parallel", "arbitrary"),
            vmem_limit_bytes=_vmem_limit_bytes()),
        cost_estimate=cost,
    )(preds_p, tgt_p)

    # lanes: 0 = ce sum, 1 = valid count; sum the per-core partials
    return jnp.sum(out[:, 0, :2], axis=0)


# ----------------------------------------------------------------------------
# Kernel 2: fused cross-entropy + attention regularization (one launch)
# ----------------------------------------------------------------------------
def _ce_war_kernel(preds_ref, tgt_ref, s_ref, out_ref, *, ignore_index):
    @pl.when(pl.program_id(1) == 0)
    def _():
        out_ref[...] = jnp.zeros_like(out_ref)

    ce_sum, valid = _ce_tile(preds_ref[...].astype(jnp.float32), tgt_ref[...],
                             ignore_index)
    s = s_ref[...].astype(jnp.float32)            # [TILE_N, L] = alphas.sum(axis=1)
    # padded rows carry s == 1.0, so (1-s)^2 == 0 there: no row masking needed
    reg = jnp.sum((1.0 - s) ** 2)
    out_ref[...] += _pack_lanes((ce_sum, valid, reg), out_ref.shape)


def _ce_war_partial_sums(preds, targets, s, ignore_index, block_rows=None):
    n, c = preds.shape
    l = s.shape[1]
    c_pad = _round_up(c, 128)
    l_pad = _round_up(l, 128)
    itemsize = jnp.dtype(preds.dtype).itemsize
    sub = _sublane_multiple(itemsize)
    per_row = (2 * c_pad * itemsize + 2 * 128 * 4 + 3 * c_pad * 4
               + 2 * l_pad * 4 + l_pad * 4)
    tile_n, nsplit, tiles_per, n_pad = _tile_plan(n, per_row, sub, block_rows)

    preds_p = jnp.pad(preds, ((0, n_pad - n), (0, 0)))
    tgt_p = jnp.pad(targets.astype(jnp.int32).reshape(n, 1),
                    ((0, n_pad - n), (0, 0)), constant_values=ignore_index)
    s_p = jnp.pad(s, ((0, n_pad - n), (0, 0)), constant_values=1.0)

    cost = pl.CostEstimate(
        flops=6 * n_pad * c + 3 * n_pad * l,
        transcendentals=n_pad * (c + 1),
        bytes_accessed=(n_pad * c * itemsize + n_pad * 4 + n_pad * l * 4
                        + nsplit * 8 * 128 * 4))

    out = pl.pallas_call(
        functools.partial(_ce_war_kernel, ignore_index=ignore_index),
        out_shape=jax.ShapeDtypeStruct((nsplit, 8, 128), jnp.float32),
        grid=(nsplit, tiles_per),
        in_specs=[
            pl.BlockSpec((tile_n, c), lambda g, i: (g * tiles_per + i, 0)),
            pl.BlockSpec((tile_n, 1), lambda g, i: (g * tiles_per + i, 0)),
            pl.BlockSpec((tile_n, l), lambda g, i: (g * tiles_per + i, 0)),
        ],
        out_specs=pl.BlockSpec((1, 8, 128), lambda g, i: (g, 0, 0)),
        compiler_params=pltpu.CompilerParams(
            dimension_semantics=("parallel", "arbitrary"),
            vmem_limit_bytes=_vmem_limit_bytes()),
        cost_estimate=cost,
    )(preds_p, tgt_p, s_p)

    # lanes: 0 = ce sum, 1 = valid count, 2 = reg sum
    return jnp.sum(out[:, 0, :3], axis=0)


# ----------------------------------------------------------------------------
# jitted top-level losses (final divides / alpha_c scale fuse with the kernel)
# ----------------------------------------------------------------------------
@functools.partial(jax.jit, static_argnames=("ignore_index", "block_rows"))
def _ce_loss(preds, targets, ignore_index=-100, block_rows=None):
    sums = _ce_partial_sums(preds, targets, ignore_index, block_rows)
    return sums[0] / sums[1]


@functools.partial(jax.jit, static_argnames=("ignore_index", "block_rows"))
def _ce_war_loss(preds, targets, alphas, alpha_c, ignore_index=-100,
                 block_rows=None):
    n, _, l = alphas.shape
    # lane-dense alphas reduction done once here; (1-s)^2 sum stays in the kernel
    s = jnp.sum(alphas, axis=1).astype(jnp.float32)
    sums = _ce_war_partial_sums(preds, targets, s, ignore_index, block_rows)
    ce = sums[0] / sums[1]
    reg = alpha_c * sums[2] / jnp.float32(n * l)
    return ce + reg


# ----------------------------------------------------------------------------
# JAX-side Criterion mirroring the PyTorch module
# ----------------------------------------------------------------------------
class Criterion:
    def __init__(self, name="ce_loss", alpha_c=1.0, ignore_index=-100):
        name = name.lower()
        if name not in ("ce_loss", "ce_loss_war"):
            raise ValueError("Loss function {} not found".format(name))
        self.name = name
        self.alpha_c = float(alpha_c)
        self.ignore_index = int(ignore_index)
        self.ignore_alphas = name == "ce_loss"

    def __call__(self, preds, targets, alphas=None):
        if self.ignore_alphas or alphas is None:
            return _ce_loss(preds, targets, ignore_index=self.ignore_index)
        return _ce_war_loss(preds, targets, alphas, jnp.float32(self.alpha_c),
                            ignore_index=self.ignore_index)


# ----------------------------------------------------------------------------
# self-test
# ----------------------------------------------------------------------------
if __name__ == "__main__":
    key = jax.random.PRNGKey(0)
    k1, k2, k3 = jax.random.split(key, 3)

    N, C = 16, 32          # batch, num classes
    T, L = 4, 16           # attention time steps, attention locations

    preds = jax.random.normal(k1, (N, C), dtype=jnp.float32)
    targets = jax.random.randint(k2, (N,), 0, C, dtype=jnp.int32)
    alphas = jax.random.uniform(k3, (N, T, L), dtype=jnp.float32)

    # pure-JAX references
    logp = jax.nn.log_softmax(preds, axis=-1)
    ref_ce = -jnp.mean(logp[jnp.arange(N), targets])
    ref_reg = jnp.mean((1.0 - alphas.sum(1)) ** 2)

    # --- default Criterion: plain cross-entropy ---
    crit = Criterion("ce_loss")
    loss = jax.block_until_ready(crit(preds, targets))
    assert jnp.allclose(loss, ref_ce, atol=1e-5, rtol=1e-4), (loss, ref_ce)

    # --- 'ce_loss_war' variant with fused attention regularization ---
    crit_war = Criterion("ce_loss_war", alpha_c=0.5)
    loss_war = jax.block_until_ready(crit_war(preds, targets, alphas))
    ref_war = ref_ce + 0.5 * ref_reg
    assert jnp.allclose(loss_war, ref_war, atol=1e-5, rtol=1e-4), (loss_war, ref_war)

    # --- multi-tile grid + megacore split + row padding + ignore_index masking ---
    N2 = 200
    k4, k5, k6 = jax.random.split(jax.random.PRNGKey(1), 3)
    preds2 = jax.random.normal(k4, (N2, C), dtype=jnp.float32)
    targets2 = jax.random.randint(k5, (N2,), 0, C, dtype=jnp.int32)
    targets2 = targets2.at[3].set(-100)     # one ignored target
    alphas2 = jax.random.uniform(k6, (N2, T, L), dtype=jnp.float32)

    loss2 = jax.block_until_ready(
        _ce_war_loss(preds2, targets2, alphas2, jnp.float32(1.0),
                     ignore_index=-100, block_rows=64))

    logp2 = jax.nn.log_softmax(preds2, axis=-1)
    valid2 = targets2 != -100
    picked2 = logp2[jnp.arange(N2), jnp.where(valid2, targets2, 0)]
    ref_ce2 = -(jnp.sum(jnp.where(valid2, picked2, 0.0)) / jnp.sum(valid2))
    ref2 = ref_ce2 + jnp.mean((1.0 - alphas2.sum(1)) ** 2)
    assert jnp.allclose(loss2, ref2, atol=1e-5, rtol=1e-4), (loss2, ref2)

    # --- bf16 preds exercise the dtype-native sublane (16) rounding path ---
    preds_bf = preds.astype(jnp.bfloat16)
    loss_bf = jax.block_until_ready(crit(preds_bf, targets))
    logp_bf = jax.nn.log_softmax(preds_bf.astype(jnp.float32), axis=-1)
    ref_bf = -jnp.mean(logp_bf[jnp.arange(N), targets])
    assert jnp.allclose(loss_bf, ref_bf, atol=1e-3, rtol=1e-3), (loss_bf, ref_bf)

    print("KERNEL_OK")
</pallas_src>

<mosaic_0001>
module attributes {stable_mosaic.version = 11 : i64} {
  func.func @_ce_loss_kernel(%arg0: i32, %arg1: i32, %arg2: memref<16x32xf32, #tpu.memory_space<vmem>>, %arg3: memref<16x1xi32, #tpu.memory_space<vmem>>, %arg4: memref<1x8x128xf32, #tpu.memory_space<vmem>>) attributes {dimension_semantics = [#tpu.dimension_semantics<parallel>, #tpu.dimension_semantics<arbitrary>], iteration_bounds = array<i64: 1, 1>, scalar_prefetch = 0 : i64, scratch_operands = 0 : i64, tpu.core_type = #tpu.core_type<tc>, window_params = [{transform_indices = @transform_0, window_bounds = array<i64: 16, 32>}, {transform_indices = @transform_1, window_bounds = array<i64: 16, 1>}, {transform_indices = @transform_2, window_bounds = array<i64: 1, 8, 128>}]} {
    %c0_i32 = arith.constant 0 : i32
    %0 = arith.cmpi eq, %arg1, %c0_i32 : i32
    %1 = arith.extui %0 : i1 to i32
    %c0_i32_0 = arith.constant 0 : i32
    %2 = arith.cmpi ne, %1, %c0_i32_0 : i32
    scf.if %2 {
      %cst_21 = arith.constant 0.000000e+00 : f32
      %58 = vector.broadcast %cst_21 : f32 to vector<1x8x128xf32>
      %c0_22 = arith.constant 0 : index
      %c0_23 = arith.constant 0 : index
      %c0_24 = arith.constant 0 : index
      %59 = vector.load %arg4[%c0_22, %c0_23, %c0_24] : memref<1x8x128xf32, #tpu.memory_space<vmem>>, vector<1x8x128xf32>
      tpu.vector_store %arg4[%c0_22, %c0_23, %c0_24], %58 {strides = array<i32>} : memref<1x8x128xf32, #tpu.memory_space<vmem>>, vector<1x8x128xf32>,
    } else {
    }
    %c0 = arith.constant 0 : index
    %c0_1 = arith.constant 0 : index
    %3 = vector.load %arg2[%c0, %c0_1] : memref<16x32xf32, #tpu.memory_space<vmem>>, vector<16x32xf32>
    %c0_2 = arith.constant 0 : index
    %c0_3 = arith.constant 0 : index
    %4 = vector.load %arg3[%c0_2, %c0_3] : memref<16x1xi32, #tpu.memory_space<vmem>>, vector<16x1xi32>
    %cst = arith.constant dense<0xFF800000> : vector<16xf32>
    %5 = vector.multi_reduction <maximumf>, %3, %cst [1] : vector<16x32xf32> to vector<16xf32>
    %6 = vector.shape_cast %5 : vector<16xf32> to vector<16x1xf32>
    %7 = vector.broadcast %6 : vector<16x1xf32> to vector<16x32xf32>
    %8 = arith.subf %3, %7 : vector<16x32xf32>
    %9 = math.exp %8 : vector<16x32xf32>
    %cst_4 = arith.constant dense<0.000000e+00> : vector<16xf32>
    %10 = vector.multi_reduction <add>, %9, %cst_4 [1] : vector<16x32xf32> to vector<16xf32>
    %11 = vector.shape_cast %10 : vector<16xf32> to vector<16x1xf32>
    %12 = math.log %11 : vector<16x1xf32>
    %13 = tpu.iota {dimensions = array<i32: 1>} : vector<16x32xi32>
    %14 = vector.broadcast %4 : vector<16x1xi32> to vector<16x32xi32>
    %15 = arith.cmpi eq, %13, %14 : vector<16x32xi32>
    %cst_5 = arith.constant 0.000000e+00 : f32
    %16 = vector.broadcast %cst_5 : f32 to vector<16x32xf32>
    %17 = arith.select %15, %8, %16 : vector<16x32xi1>, vector<16x32xf32>
    %cst_6 = arith.constant dense<0.000000e+00> : vector<16xf32>
    %18 = vector.multi_reduction <add>, %17, %cst_6 [1] : vector<16x32xf32> to vector<16xf32>
    %19 = vector.shape_cast %18 : vector<16xf32> to vector<16x1xf32>
    %c-100_i32 = arith.constant -100 : i32
    %20 = vector.broadcast %c-100_i32 : i32 to vector<16x1xi32>
    %21 = arith.cmpi ne, %4, %20 : vector<16x1xi32>
    %22 = arith.extui %21 : vector<16x1xi1> to vector<16x1xi32>
    %23 = arith.sitofp %22 : vector<16x1xi32> to vector<16x1xf32>
    %24 = arith.subf %12, %19 : vector<16x1xf32>
    %25 = arith.mulf %24, %23 : vector<16x1xf32>
    %26 = vector.shape_cast %25 : vector<16x1xf32> to vector<1x16x1xf32>
    %cst_7 = arith.constant dense<0.000000e+00> : vector<1xf32>
    %27 = vector.multi_reduction <add>, %26, %cst_7 [1, 2] : vector<1x16x1xf32> to vector<1xf32>
    %28 = vector.shape_cast %27 : vector<1xf32> to vector<1x1x1xf32>
    %29 = vector.extract %28[0, 0, 0] : f32 from vector<1x1x1xf32>
    %30 = vector.shape_cast %23 : vector<16x1xf32> to vector<1x16x1xf32>
    %cst_8 = arith.constant dense<0.000000e+00> : vector<1xf32>
    %31 = vector.multi_reduction <add>, %30, %cst_8 [1, 2] : vector<1x16x1xf32> to vector<1xf32>
    %32 = vector.shape_cast %31 : vector<1xf32> to vector<1x1x1xf32>
    %33 = vector.extract %32[0, 0, 0] : f32 from vector<1x1x1xf32>
    %c0_9 = arith.constant 0 : index
    %c0_10 = arith.constant 0 : index
    %c0_11 = arith.constant 0 : index
    %34 = vector.load %arg4[%c0_9, %c0_10, %c0_11] : memref<1x8x128xf32, #tpu.memory_space<vmem>>, vector<1x8x128xf32>
    %35 = tpu.iota {dimensions = array<i32: 2>} : vector<1x8x128xi32>
    %36 = tpu.iota {dimensions = array<i32: 1>} : vector<1x8x128xi32>
    %cst_12 = arith.constant 0.000000e+00 : f32
    %37 = vector.broadcast %cst_12 : f32 to vector<1x8x128xf32>
    %c0_i32_13 = arith.constant 0 : i32
    %38 = vector.broadcast %c0_i32_13 : i32 to vector<1x8x128xi32>
    %39 = arith.cmpi eq, %36, %38 : vector<1x8x128xi32>
    %c0_i32_14 = arith.constant 0 : i32
    %40 = vector.broadcast %c0_i32_14 : i32 to vector<1x8x128xi32>
    %41 = arith.cmpi eq, %35, %40 : vector<1x8x128xi32>
    %42 = arith.andi %39, %41 : vector<1x8x128xi1>
    %cst_15 = arith.constant 0.000000e+00 : f32
    %43 = vector.broadcast %29 : f32 to vector<1x8x128xf32>
    %44 = vector.broadcast %cst_15 : f32 to vector<1x8x128xf32>
    %45 = arith.select %42, %43, %44 : vector<1x8x128xi1>, vector<1x8x128xf32>
    %46 = arith.addf %37, %45 : vector<1x8x128xf32>
    %c0_i32_16 = arith.constant 0 : i32
    %47 = vector.broadcast %c0_i32_16 : i32 to vector<1x8x128xi32>
    %48 = arith.cmpi eq, %36, %47 : vector<1x8x128xi32>
    %c1_i32 = arith.constant 1 : i32
    %49 = vector.broadcast %c1_i32 : i32 to vector<1x8x128xi32>
    %50 = arith.cmpi eq, %35, %49 : vector<1x8x128xi32>
    %51 = arith.andi %48, %50 : vector<1x8x128xi1>
    %cst_17 = arith.constant 0.000000e+00 : f32
    %52 = vector.broadcast %33 : f32 to vector<1x8x128xf32>
    %53 = vector.broadcast %cst_17 : f32 to vector<1x8x128xf32>
    %54 = arith.select %51, %52, %53 : vector<1x8x128xi1>, vector<1x8x128xf32>
    %55 = arith.addf %46, %54 : vector<1x8x128xf32>
    %56 = arith.addf %34, %55 : vector<1x8x128xf32>
    %c0_18 = arith.constant 0 : index
    %c0_19 = arith.constant 0 : index
    %c0_20 = arith.constant 0 : index
    %57 = vector.load %arg4[%c0_18, %c0_19, %c0_20] : memref<1x8x128xf32, #tpu.memory_space<vmem>>, vector<1x8x128xf32>
    tpu.vector_store %arg4[%c0_18, %c0_19, %c0_20], %56 {strides = array<i32>} : memref<1x8x128xf32, #tpu.memory_space<vmem>>, vector<1x8x128xf32>,
    return
  }
  func.func @transform_0(%arg0: i32, %arg1: i32) -> (i32, i32) {
    %c1_i32 = arith.constant 1 : i32
    %0 = arith.muli %arg0, %c1_i32 : i32
    %1 = arith.addi %0, %arg1 : i32
    %c0_i32 = arith.constant 0 : i32
    %c0_i32_0 = arith.constant 0 : i32
    return %1, %c0_i32 : i32, i32
  }
  func.func @transform_1(%arg0: i32, %arg1: i32) -> (i32, i32) {
    %c1_i32 = arith.constant 1 : i32
    %0 = arith.muli %arg0, %c1_i32 : i32
    %1 = arith.addi %0, %arg1 : i32
    %c0_i32 = arith.constant 0 : i32
    %c0_i32_0 = arith.constant 0 : i32
    return %1, %c0_i32 : i32, i32
  }
  func.func @transform_2(%arg0: i32, %arg1: i32) -> (i32, i32, i32) {
    %c0_i32 = arith.constant 0 : i32
    %c0_i32_0 = arith.constant 0 : i32
    %c0_i32_1 = arith.constant 0 : i32
    return %arg0, %c0_i32, %c0_i32_0 : i32, i32, i32
  }
}

</mosaic_0001>

<bundles_post_ra>
// kernel: _ce_loss.1
= control target key start
LH: loop header
LB: loop body
LE: loop exit
PB: predicated region body
PF: predicated region fallthrough
CT: control target
= control target key end

     0   :  { %vm64_vm0 = vcmask 261120   ;;  %v190_v2 = vmov 0   ;;  %v87_v12 = vlaneseq  ;;  %v191_v25 = vmov 0.0   ;;  %s240_s0 = inlined_call_operand.vmem [shape: f32[16,32], index: 0, kind: input, shape index: {}]   ;;  %s241_s1 = inlined_call_operand.vmem [shape: s32[16,1], index: 1, kind: input, shape index: {}]   ;;  %s242_s2 = inlined_call_operand.vmem [shape: f32[1,8,128], index: 2, kind: output, shape index: {}]  }
   0x1   :  { %v60_v0 = vld [vmem:[%s240_s0] sm:$0xff]  ;;  %v61_v1 = vld [vmem:[%s240_s0 + $0x8] sm:$0xff]  ;;  %180 = vset.pattern.permute.xlu1 %v190_v2  ;;  %181 = vset.pattern.permute.xlu0 %v190_v2  ;;  %vm115_vm5 = vcmask 7168  }
   0x2   :  { %v62_v3 = vld [vmem:[%s241_s1] sm:$0xff]  ;;  %v65_v4 = vsel %vm64_vm0, %v60_v0, -inf  ;;  %v63_v5 = vld [vmem:[%s241_s1 + $0x8] sm:$0xff]  ;;  %v68_v6 = vsel %vm64_vm0, %v61_v1, -inf  ;;  %v222_v15 = vand.u32 127, %v87_v12  ;;  %v142_v60 = vshrl.u32 %v87_v12, 7 }
   0x3   :  { %90 = vperm.xlu1 %180, %v62_v3   ;;  %66 = vmax.xlane.f32.xlu0 %v65_v4  ;;  %vm105_vm3 = vcmp.ne.s32.totalorder %v62_v3, 4294967196  ;;  %vm106_vm4 = vcmp.ne.s32.totalorder %v63_v5, 4294967196 }
   0x4   :  { %v172_v26 = vsel %vm105_vm3, 1.0, %v191_v25  ;;  %v173_v27 = vsel %vm106_vm4, 1.0, %v191_v25  ;;  %vm143_vm6 = vcmp.eq.s32.totalorder %v142_v60, 0  ;;  %vm144_vm7 = vcmp.eq.s32.totalorder %v222_v15, 0 }
   0x5   :  { %v128_v28 = vsel %vm115_vm5, %v172_v26, 0.0  ;;  %v129_v29 = vsel %vm115_vm5, %v173_v27, 0.0  ;;  %vm149_vm8 = vcmp.eq.s32.totalorder %v222_v15, 1  ;;  %vm145_vm9 = vmand %vm143_vm6, %vm144_vm7 }
   0x6   :  { %v130_v30 = vadd.f32 %v129_v29, %v128_v28  ;;  %vm150_vm10 = vmand %vm143_vm6, %vm149_vm8 }
   0x7   :  { %93 = vperm.xlu1 %180, %v63_v5   ;;  %69 = vmax.xlane.f32.xlu0 %v68_v6 }
  0x82   :  { %v91_v14 = vpop.permute.xlu1 %90 }
  0x83   :  { %vm95_vm1 = vcmp.eq.s32.totalorder %v222_v15, %v91_v14 }
  0x86   :  { %v94_v17 = vpop.permute.xlu1 %93 }
  0x87   :  { %vm96_vm2 = vcmp.eq.s32.totalorder %v222_v15, %v94_v17 }
  0x90   :  { %v67_v7 = vpop.xlane.xlu0 %66 }
  0x91   :  { %v71_v8 = vsub.f32 %v60_v0, %v67_v7 }
  0x93   :  { %v73_v9 = vmul.f32 1.442695, %v71_v8  ;;  %v97_v19 = vsel %vm95_vm1, %v71_v8, 0.0 }
  0x94   :  { %v70_v10 = vpop.xlane.xlu0 %69  ;;  %v99_v21 = vsel %vm64_vm0, %v97_v19, 0.0 }
  0x95   :  { %182 = vpow2.f32 %v73_v9  ;;  %v72_v11 = vsub.f32 %v61_v1, %v70_v10 }
  0x97   :  { %v75_v13 = vmul.f32 1.442695, %v72_v11  ;;  %v98_v23 = vsel %vm96_vm2, %v72_v11, 0.0 }
  0x98   :  { %v102_v24 = vsel %vm64_vm0, %v98_v23, 0.0 }
  0x99   :  { %184 = vpow2.f32 %v75_v13 }
  0x9f   :  { %v183_v16 = vpop.eup %182 }
  0xa0   :  { %v77_v18 = vsel %vm64_vm0, %v183_v16, 0.0 }
  0xa1   :  { %78 = vadd.xlane.f32.xlu0 %v77_v18 }
  0xa3   :  { %v185_v20 = vpop.eup %184 }
  0xa4   :  { %v80_v22 = vsel %vm64_vm0, %v185_v20, 0.0 }
  0xa5   :  { %100 = vadd.xlane.f32.xlu0 %v99_v21  ;;  %81 = vadd.xlane.f32.xlu1 %v80_v22 }
  0xa9   :  { %103 = vadd.xlane.f32.xlu0 %v102_v24 }
 0x12e   :  { %v79_v31 = vpop.xlane.xlu0 %78 }
 0x12f   :  { %186 = vlog2.f32 %v79_v31 }
 0x132   :  { %v82_v32 = vpop.xlane.xlu1 %81  ;;  %v101_v34 = vpop.xlane.xlu0 %100 }
 0x133   :  { %188 = vlog2.f32 %v82_v32 }
 0x136   :  { %v104_v39 = vpop.xlane.xlu0 %103 }
 0x139   :  { %v187_v33 = vpop.eup %186 }
 0x13a   :  { %v84_v35 = vmul.f32 0.6931472, %v187_v33 }
 0x13c   :  { %v111_v36 = vsub.f32 %v84_v35, %v101_v34 }
 0x13d   :  { %v189_v37 = vpop.eup %188 }
 0x13e   :  { %v86_v38 = vmul.f32 0.6931472, %v189_v37  ;;  %v113_v40 = vmul.f32 %v172_v26, %v111_v36 }
 0x140   :  { %v112_v41 = vsub.f32 %v86_v38, %v104_v39  ;;  %v116_v43 = vsel %vm115_vm5, %v113_v40, 0.0 }
 0x142   :  { %v114_v42 = vmul.f32 %v173_v27, %v112_v41 }
 0x144   :  { %v117_v44 = vsel %vm115_vm5, %v114_v42, 0.0 }
 0x145   :  { %v118_v45 = vadd.f32 %v117_v44, %v116_v43 }
 0x147   :  { %119 = vadd.xlane.f32.xlu0 %v118_v45 }
 0x14b   :  { %131 = vadd.xlane.f32.xlu0 %v130_v30 }
 0x1d4   :  { %v120_v46 = vpop.xlane.xlu0 %119 }
 0x1d5   :  { %v121_v47 = vrot.slane %v120_v46, 4 }
 0x1d7   :  { %v122_v48 = vadd.f32 %v121_v47, %v120_v46 }
 0x1d8   :  { %v132_v49 = vpop.xlane.xlu0 %131 }
 0x1d9   :  { %v123_v50 = vrot.slane %v122_v48, 2  ;;  %v133_v51 = vrot.slane %v132_v49, 4 }
 0x1db   :  { %v134_v52 = vadd.f32 %v133_v51, %v132_v49  ;;  %v124_v53 = vadd.f32 %v123_v50, %v122_v48 }
 0x1dd   :  { %v135_v54 = vrot.slane %v134_v52, 2  ;;  %v125_v55 = vrot.slane %v124_v53, 1 }
 0x1df   :  { %v136_v56 = vadd.f32 %v135_v54, %v134_v52  ;;  %v126_v57 = vadd.f32 %v125_v55, %v124_v53 }
 0x1e1   :  { %174 = vpush %v126_v57  ;;  %v137_v58 = vrot.slane %v136_v56, 1 }
 0x1e3   :  { %v138_v59 = vadd.f32 %v137_v58, %v136_v56 }
 0x1e5   :  { %176 = vpush %v138_v59 }
 0x212   :  { %s175_s0 = spop %174 }
 0x213   :  { %v146_v61 = vstv %s175_s0 }
 0x214   :  { %v147_v63 = vsel %vm145_vm9, %v146_v61, 0.0 }
 0x216   :  { %s177_s1 = spop %176 }
 0x217   :  { %v151_v62 = vstv %s177_s1 }
 0x218   :  { %v152_v0 = vsel %vm150_vm10, %v151_v62, 0.0 }
 0x219   :  { %v153_v1 = vadd.f32 %v152_v0, %v147_v63 }
 0x21b   :  { %155 = vst [vmem:[%s242_s2] sm:$0xff] %v153_v1 }

</bundles_post_ra>
